<compile_context>
chip_gen: v5e
topology: v5e:2x2
jax: 0.10.0
libtpu: 0.0.40
codegen_flags: <defaults>
</compile_context>

<pallas_src>
import math
from typing import NamedTuple, Optional

import jax
import jax.numpy as jnp
from jax.experimental import pallas as pl
from jax.experimental.pallas import tpu as pltpu


class QKVParams(NamedTuple):
    """Pre-transposed projection parameters (built once at init)."""
    w_q: jax.Array                 # (dim, qk_dim), or (dim, out_dim) when fused
    w_kv: Optional[jax.Array]      # (dim, kv_dim), or None when fused
    b_q: Optional[jax.Array]       # (1, qk_dim) / (1, out_dim) / None
    b_kv: Optional[jax.Array]      # (1, kv_dim) / None


def prepare_qkv_params(weight, bias, qk_dim, param_dtype=None):
    """One-off parameter prep: split + transpose nn.Linear's (out, in) weight.

    Store/carry the result instead of the raw torch-layout weight so the
    forward never pays a per-call HBM transpose of the weight matrix.
    """
    out_dim, dim = weight.shape
    kv_dim = out_dim - qk_dim
    dt = weight.dtype if param_dtype is None else param_dtype
    w_t = jnp.transpose(weight).astype(dt)                      # (dim, out_dim)
    b = None if bias is None else bias.astype(jnp.float32)

    if qk_dim % 128 == 0:
        # Fused path: one lane-dense matmul, q/kv split is lane-aligned.
        return QKVParams(w_t, None,
                         None if b is None else b.reshape(1, out_dim), None)
    return QKVParams(
        w_t[:, :qk_dim], w_t[:, qk_dim:],
        None if b is None else b[:qk_dim].reshape(1, qk_dim),
        None if b is None else b[qk_dim:].reshape(1, kv_dim))


# ---------------------------------------------------------------- kernels ---

def _make_fused_kernel(qk_dim, has_bias):
    if has_bias:
        def kernel(x_ref, w_ref, b_ref, q_ref, kv_ref):
            y = jnp.dot(x_ref[...], w_ref[...],
                        preferred_element_type=jnp.float32)
            y = y + b_ref[...]
            q_ref[...] = y[:, :qk_dim].astype(q_ref.dtype)
            kv_ref[...] = y[:, qk_dim:].astype(kv_ref.dtype)
    else:
        def kernel(x_ref, w_ref, q_ref, kv_ref):
            y = jnp.dot(x_ref[...], w_ref[...],
                        preferred_element_type=jnp.float32)
            q_ref[...] = y[:, :qk_dim].astype(q_ref.dtype)
            kv_ref[...] = y[:, qk_dim:].astype(kv_ref.dtype)
    return kernel


def _make_split_kernel(has_bias):
    if has_bias:
        def kernel(x_ref, wq_ref, wkv_ref, bq_ref, bkv_ref, q_ref, kv_ref):
            x = x_ref[...]
            q = jnp.dot(x, wq_ref[...], preferred_element_type=jnp.float32)
            q_ref[...] = (q + bq_ref[...]).astype(q_ref.dtype)   # finish q first
            kv = jnp.dot(x, wkv_ref[...], preferred_element_type=jnp.float32)
            kv_ref[...] = (kv + bkv_ref[...]).astype(kv_ref.dtype)
    else:
        def kernel(x_ref, wq_ref, wkv_ref, q_ref, kv_ref):
            x = x_ref[...]
            q = jnp.dot(x, wq_ref[...], preferred_element_type=jnp.float32)
            q_ref[...] = q.astype(q_ref.dtype)
            kv = jnp.dot(x, wkv_ref[...], preferred_element_type=jnp.float32)
            kv_ref[...] = kv.astype(kv_ref.dtype)
    return kernel


# ------------------------------------------------------------- tile sizing ---

_VMEM_BUDGET = 24 * 1024 * 1024   # conservative: fits v5e/v6e/v7x scoped VMEM
_VMEM_LIMIT = 32 * 1024 * 1024    # override v5e's 16 MiB default scoped limit


def _round_up(x, m):
    return ((x + m - 1) // m) * m


def _sublane_pack(dtype):
    # Minimum sublane tile per dtype: 8 (f32), 16 (bf16), 32 (int8/fp8).
    return {1: 32, 2: 16}.get(jnp.dtype(dtype).itemsize, 8)


def _vmem_bytes(tm, dim, out_dim, x_bytes, w_bytes, out_bytes):
    return (2 * tm * dim * x_bytes          # double-buffered x tile
            + dim * out_dim * w_bytes       # single-buffered resident weights
            + 2 * tm * out_dim * out_bytes  # double-buffered q + kv tiles
            + tm * out_dim * 4              # f32 matmul intermediate
            + 2 * out_dim * 4)              # biases


def _pick_tile_m(M, tile_m, dim, out_dim, x_bytes, w_bytes, out_bytes, sub):
    gran = 256 if M >= 512 else sub          # MXU granularity vs sublane pack
    # >= 2 grid steps when possible so v7x's second TensorCore gets work.
    tm = max(sub, min(tile_m, _round_up(pl.cdiv(M, 2), gran)))
    while tm > gran and _vmem_bytes(tm, dim, out_dim, x_bytes, w_bytes,
                                    out_bytes) > _VMEM_BUDGET:
        tm = max(gran, _round_up(tm // 2, gran))
    return tm


# ----------------------------------------------------------------- forward ---

def qkv_linear(x, params: QKVParams, qk_dim, *, tile_m=512):
    """QKVLinear forward.  x: (..., dim).  Returns (q, kv)."""
    *lead, dim = x.shape
    M = math.prod(lead) if lead else 1
    fused = params.w_kv is None
    has_bias = params.b_q is not None

    if fused:
        out_dim = params.w_q.shape[1]
        kv_dim = out_dim - qk_dim
    else:
        kv_dim = params.w_kv.shape[1]
        out_dim = qk_dim + kv_dim

    x2 = x.reshape(M, dim)                   # free reshape, no data movement

    x_bytes = jnp.dtype(x.dtype).itemsize
    w_bytes = jnp.dtype(params.w_q.dtype).itemsize
    out_bytes = x_bytes
    tm = _pick_tile_m(M, tile_m, dim, out_dim, x_bytes, w_bytes, out_bytes,
                      _sublane_pack(x.dtype))
    grid = (pl.cdiv(M, tm),)

    def resident(shape):
        # Constant index_map (never re-DMAed); single buffer halves its VMEM.
        return pl.BlockSpec(shape, lambda i: (0,) * len(shape),
                            pipeline_mode=pl.Buffered(1))

    in_specs = [pl.BlockSpec((tm, dim), lambda i: (i, 0))]
    args = [x2]
    if fused:
        kernel = _make_fused_kernel(qk_dim, has_bias)
        in_specs.append(resident((dim, out_dim)))
        args.append(params.w_q)
        if has_bias:
            in_specs.append(resident((1, out_dim)))
            args.append(params.b_q)
    else:
        kernel = _make_split_kernel(has_bias)
        in_specs += [resident((dim, qk_dim)), resident((dim, kv_dim))]
        args += [params.w_q, params.w_kv]
        if has_bias:
            in_specs += [resident((1, qk_dim)), resident((1, kv_dim))]
            args += [params.b_q, params.b_kv]

    cost = pl.CostEstimate(
        flops=2 * M * dim * out_dim,
        transcendentals=0,
        bytes_accessed=(M * dim * x_bytes + dim * out_dim * w_bytes
                        + M * out_dim * out_bytes
                        + (out_dim * 4 if has_bias else 0)))

    q2, kv2 = pl.pallas_call(
        kernel,
        out_shape=(jax.ShapeDtypeStruct((M, qk_dim), x.dtype),
                   jax.ShapeDtypeStruct((M, kv_dim), x.dtype)),
        grid_spec=pltpu.PrefetchScalarGridSpec(
            num_scalar_prefetch=0,
            grid=grid,
            in_specs=in_specs,
            out_specs=[pl.BlockSpec((tm, qk_dim), lambda i: (i, 0)),
                       pl.BlockSpec((tm, kv_dim), lambda i: (i, 0))],
        ),
        compiler_params=pltpu.CompilerParams(
            dimension_semantics=("parallel",),
            vmem_limit_bytes=_VMEM_LIMIT),
        cost_estimate=cost,
    )(*args)

    return q2.reshape(*lead, qk_dim), kv2.reshape(*lead, kv_dim)


# --------------------------------------------------------------- reference ---

def _reference(x, weight, bias, qk_dim):
    y = jnp.einsum("...d,od->...o", x, weight)
    if bias is not None:
        y = y + bias
    return y[..., :qk_dim], y[..., qk_dim:]


if __name__ == "__main__":
    key = jax.random.PRNGKey(0)

    def run_case(B, S, dim, qk_dim, use_bias, case_key):
        out_dim = 2 * qk_dim + dim
        kx, kw, kb = jax.random.split(case_key, 3)
        x = jax.random.normal(kx, (B, S, dim), dtype=jnp.float32)
        weight = jax.random.normal(kw, (out_dim, dim),
                                   dtype=jnp.float32) / math.sqrt(dim)
        bias = (jax.random.normal(kb, (out_dim,), dtype=jnp.float32) * 0.1
                if use_bias else None)

        params = prepare_qkv_params(weight, bias, qk_dim)   # once, at "init"
        fwd = jax.jit(qkv_linear, static_argnames=("qk_dim", "tile_m"))
        q, kv = jax.block_until_ready(fwd(x, params, qk_dim=qk_dim))

        q_ref, kv_ref = _reference(x, weight, bias, qk_dim)
        assert q.shape == (B, S, qk_dim)
        assert kv.shape == (B, S, qk_dim + dim)
        assert jnp.max(jnp.abs(q - q_ref)) < 1e-3
        assert jnp.max(jnp.abs(kv - kv_ref)) < 1e-3

    k1, k2 = jax.random.split(key)
    run_case(2, 8, 32, 16, True, k1)      # split path (qk_dim % 128 != 0) + bias
    run_case(2, 8, 256, 128, False, k2)   # fused lane-aligned path, no bias
    print("KERNEL_OK")
</pallas_src>

<mosaic_0001>
module attributes {stable_mosaic.version = 11 : i64} {
  func.func @kernel(%arg0: i32, %arg1: memref<8x32xf32, #tpu.memory_space<vmem>>, %arg2: memref<32x16xf32, #tpu.memory_space<vmem>>, %arg3: memref<32x48xf32, #tpu.memory_space<vmem>>, %arg4: memref<1x16xf32, #tpu.memory_space<vmem>>, %arg5: memref<1x48xf32, #tpu.memory_space<vmem>>, %arg6: memref<8x16xf32, #tpu.memory_space<vmem>>, %arg7: memref<8x48xf32, #tpu.memory_space<vmem>>) attributes {dimension_semantics = [#tpu.dimension_semantics<parallel>], iteration_bounds = array<i64: 2>, scalar_prefetch = 0 : i64, scratch_operands = 0 : i64, tpu.core_type = #tpu.core_type<tc>, window_params = [{transform_indices = @transform_0, window_bounds = array<i64: 8, 32>}, {pipeline_mode = #tpu.pipeline_mode<synchronous>, transform_indices = @transform_1, window_bounds = array<i64: 32, 16>}, {pipeline_mode = #tpu.pipeline_mode<synchronous>, transform_indices = @transform_2, window_bounds = array<i64: 32, 48>}, {pipeline_mode = #tpu.pipeline_mode<synchronous>, transform_indices = @transform_3, window_bounds = array<i64: 1, 16>}, {pipeline_mode = #tpu.pipeline_mode<synchronous>, transform_indices = @transform_4, window_bounds = array<i64: 1, 48>}, {transform_indices = @transform_5, window_bounds = array<i64: 8, 16>}, {transform_indices = @transform_6, window_bounds = array<i64: 8, 48>}]} {
    %c0 = arith.constant 0 : index
    %c0_0 = arith.constant 0 : index
    %0 = vector.load %arg1[%c0, %c0_0] : memref<8x32xf32, #tpu.memory_space<vmem>>, vector<8x32xf32>
    %c0_1 = arith.constant 0 : index
    %c0_2 = arith.constant 0 : index
    %1 = vector.load %arg2[%c0_1, %c0_2] : memref<32x16xf32, #tpu.memory_space<vmem>>, vector<32x16xf32>
    %cst = arith.constant dense<0.000000e+00> : vector<8x16xf32>
    %2 = tpu.matmul %0, %1, %cst {dimension_numbers = #tpu.dot_dimension_numbers<[1], [0], [0], [1], [0, 0, 1, 1], [], []>} : vector<8x32xf32>, vector<32x16xf32>, vector<8x16xf32> -> vector<8x16xf32>
    %c0_3 = arith.constant 0 : index
    %c0_4 = arith.constant 0 : index
    %3 = vector.load %arg4[%c0_3, %c0_4] : memref<1x16xf32, #tpu.memory_space<vmem>>, vector<1x16xf32>
    %4 = vector.broadcast %3 : vector<1x16xf32> to vector<8x16xf32>
    %5 = arith.addf %2, %4 : vector<8x16xf32>
    %c0_5 = arith.constant 0 : index
    %c0_6 = arith.constant 0 : index
    %6 = vector.load %arg6[%c0_5, %c0_6] : memref<8x16xf32, #tpu.memory_space<vmem>>, vector<8x16xf32>
    tpu.vector_store %arg6[%c0_5, %c0_6], %5 {strides = array<i32>} : memref<8x16xf32, #tpu.memory_space<vmem>>, vector<8x16xf32>,
    %c0_7 = arith.constant 0 : index
    %c0_8 = arith.constant 0 : index
    %7 = vector.load %arg3[%c0_7, %c0_8] : memref<32x48xf32, #tpu.memory_space<vmem>>, vector<32x48xf32>
    %cst_9 = arith.constant dense<0.000000e+00> : vector<8x48xf32>
    %8 = tpu.matmul %0, %7, %cst_9 {dimension_numbers = #tpu.dot_dimension_numbers<[1], [0], [0], [1], [0, 0, 1, 1], [], []>} : vector<8x32xf32>, vector<32x48xf32>, vector<8x48xf32> -> vector<8x48xf32>
    %c0_10 = arith.constant 0 : index
    %c0_11 = arith.constant 0 : index
    %9 = vector.load %arg5[%c0_10, %c0_11] : memref<1x48xf32, #tpu.memory_space<vmem>>, vector<1x48xf32>
    %10 = vector.broadcast %9 : vector<1x48xf32> to vector<8x48xf32>
    %11 = arith.addf %8, %10 : vector<8x48xf32>
    %c0_12 = arith.constant 0 : index
    %c0_13 = arith.constant 0 : index
    %12 = vector.load %arg7[%c0_12, %c0_13] : memref<8x48xf32, #tpu.memory_space<vmem>>, vector<8x48xf32>
    tpu.vector_store %arg7[%c0_12, %c0_13], %11 {strides = array<i32>} : memref<8x48xf32, #tpu.memory_space<vmem>>, vector<8x48xf32>,
    return
  }
  func.func @transform_0(%arg0: i32) -> (i32, i32) {
    %c0_i32 = arith.constant 0 : i32
    %c0_i32_0 = arith.constant 0 : i32
    return %arg0, %c0_i32 : i32, i32
  }
  func.func @transform_1(%arg0: i32) -> (i32, i32) {
    %c0_i32 = arith.constant 0 : i32
    %c0_i32_0 = arith.constant 0 : i32
    %c0_i32_1 = arith.constant 0 : i32
    return %c0_i32, %c0_i32_0 : i32, i32
  }
  func.func @transform_2(%arg0: i32) -> (i32, i32) {
    %c0_i32 = arith.constant 0 : i32
    %c0_i32_0 = arith.constant 0 : i32
    %c0_i32_1 = arith.constant 0 : i32
    return %c0_i32, %c0_i32_0 : i32, i32
  }
  func.func @transform_3(%arg0: i32) -> (i32, i32) {
    %c0_i32 = arith.constant 0 : i32
    %c0_i32_0 = arith.constant 0 : i32
    %c0_i32_1 = arith.constant 0 : i32
    return %c0_i32, %c0_i32_0 : i32, i32
  }
  func.func @transform_4(%arg0: i32) -> (i32, i32) {
    %c0_i32 = arith.constant 0 : i32
    %c0_i32_0 = arith.constant 0 : i32
    %c0_i32_1 = arith.constant 0 : i32
    return %c0_i32, %c0_i32_0 : i32, i32
  }
  func.func @transform_5(%arg0: i32) -> (i32, i32) {
    %c0_i32 = arith.constant 0 : i32
    %c0_i32_0 = arith.constant 0 : i32
    return %arg0, %c0_i32 : i32, i32
  }
  func.func @transform_6(%arg0: i32) -> (i32, i32) {
    %c0_i32 = arith.constant 0 : i32
    %c0_i32_0 = arith.constant 0 : i32
    return %arg0, %c0_i32 : i32, i32
  }
}

</mosaic_0001>

<bundles_post_ra>
// kernel: qkv_linear.1
= control target key start
LH: loop header
LB: loop body
LE: loop exit
PB: predicated region body
PF: predicated region fallthrough
CT: control target
= control target key end

     0   :  { %s787_s0 = inlined_call_operand.vmem [shape: f32[16,32], index: 0, kind: input, shape index: {}]   ;;  %s788_s1 = inlined_call_operand.vmem [shape: f32[32,16], index: 1, kind: input, shape index: {}]   ;;  %s789_s2 = inlined_call_operand.vmem [shape: f32[32,48], index: 2, kind: input, shape index: {}]   ;;  %s790_s3 = inlined_call_operand.vmem [shape: f32[1,16], index: 3, kind: input, shape index: {}]   ;;  %s791_s4 = inlined_call_operand.vmem [shape: f32[1,48], index: 4, kind: input, shape index: {}]   ;;  %s792_s5 = inlined_call_operand.hbm [shape: f32[16,16], index: 5, kind: output, shape index: {0}]   ;;  %s793_s6 = inlined_call_operand.hbm [shape: f32[16,48], index: 6, kind: output, shape index: {1}]  }
   0x1   :  { %794 = sst [smem:[#allocation8_spill]] %s787_s0 }
   0x2   :  { %12 = vsyncpa [#allocation3], 0 }
   0x3   :  { %14 = vsyncpa [#allocation3 + $0x1], 0 }
   0x4   :  { %15 = vsyncpa [#allocation5], 0 }
   0x5   :  { %17 = vsyncpa [#allocation5 + $0x1], 0  ;;  %s642_s21 = smov 0   ;;  %s644_s22 = smov 0  }
   0x6   :  { %s646_s23 = smov 0   ;;  %s648_s24 = smov 0  }
   0x7 LB: > { %s663_s25 = sadd.s32 4294967295, %s605_s24   ;;  %s450_s26 = sadd.s32 4294967294, %s605_s24   ;;  %s605_s24 = sphi %s648_s24, %s801_s24   ;;  %s601_s23 = sphi %s646_s23, %s800_s23   ;;  %s597_s22 = sphi %s644_s22, %s799_s22   ;;  %s593_s21 = sphi %s642_s21, %s798_s21  }
   0x8   : > { %s667_s27 = sadd.s32 1, %s605_s24   ;;  %s140_s28 = sadd.s32 1, %s601_s23 }
   0x9   : > { %s137_s29 = ssub.s32 %s605_s24, %s667_s27  ;;  %p150_p0 = scmp.ne.s32.totalorder %s601_s23, %s597_s22 }
   0xa   : > { %p138_p1 = scmp.eq.s32.totalorder %s137_s29, 0  ;;  %p151_p2 = scmp.eq.s32.totalorder %s663_s25, 1 }
   0xb   : > { %p156_p3 = scmp.ne.s32.totalorder %s597_s22, %s593_s21  ;;  %p157_p4 = scmp.eq.s32.totalorder %s450_s26, 1 }
   0xc   : > { %s678_s30 = scalar_select %p138_p1, %s601_s23, %s140_s28  }
   0xd   : > { %p680_p5 = por %p151_p2, %p150_p0  ;;  %p684_p6 = por %p157_p4, %p156_p3 }
   0xe   : > { %p453_p7 = scmp.ge.s32.totalorder %s605_s24, 1  ;;  %p220_p8 = scmp.lt.s32.totalorder %s605_s24, 3 }
  0x10   : > { %p221_p9 = pnand %p453_p7, %p220_p8 }
  0x11   : > { %p254_p10 = scmp.lt.s32.totalorder (!%p221_p9), %s663_s25, 1  ;;  %s797_s0 = sld [smem:[#allocation8_spill]] (!%p221_p9) }
  0x12   : > { %224 = sbr.rel (%p221_p9) target bundleno = 174 (0xae), region = 40  ;;  %s720_s15 = sand.u32 (!%p221_p9), 1, %s597_s22  }
  0x13   : > { %s454_s16 = sshll.u32 (!%p221_p9), %s720_s15, 3  ;;  %s461_s17 = sshll.u32 (!%p221_p9), %s663_s25, 3 }
  0x14   : > { %s339_s20 = scalar_lea.hbm (!%p221_p9), %s792_s5, %s461_s17  ;;  %s353_s29 = scalar_lea.hbm (!%p221_p9), %s793_s6, %s461_s17 }
  0x15   : > { %s246_s13 = scalar_lea.vmem (!%p221_p9), [#allocation2], %s454_s16  ;;  %s357_s19 = sshll.u32 (!%p221_p9), %s353_s29, 4  ;;  %s741_s19 = int_to_ptr.hbm [resolvable:$true] %s357_s19 }
  0x16   : > { %s324_s17 = scalar_lea.sflag (!%p221_p9), [#allocation3], %s720_s15  ;;  %s531_s29 = scalar_lea.hbm (!%p221_p9), %s792_s5, 16 }
  0x17   : > { %v262_v0 = vld [vmem:[%s788_s1 + $0x18] sm:$0xff]  ;;  %v261_v2 = vld [vmem:[%s788_s1 + $0x10] sm:$0xff]  ;;  %v260_v4 = vld [vmem:[%s788_s1 + $0x8] sm:$0xff]  ;;  %s255_s26 = scalar_select %p254_p10, %s663_s25, 1  ;;  %vm267_vm0 = vcmask 261120   ;;  %vm291_vm1 = vcmask 130048  }
  0x18   : > { %v296_v1 = vld [vmem:[%s789_s2 + $0x18] sm:$0xff]  ;;  %283 = vmatpush.msra.mxu0 %v262_v0  ;;  %v295_v3 = vld [vmem:[%s789_s2 + $0x10] sm:$0xff]  ;;  %v294_v5 = vld [vmem:[%s789_s2 + $0x8] sm:$0xff]  ;;  %s343_s25 = sshll.u32 %s339_s20, 4  ;;  %vm321_vm2 = vcmask 392192   ;;  %s344_s25 = int_to_ptr.hbm [resolvable:$true] %s343_s25 }
  0x19   : > { %313 = vmatpush.msra.mxu1 %v296_v1  ;;  %v259_v6 = vld [vmem:[%s788_s1] sm:$0xff]  ;;  %s456_s11 = sshll.u32 %s255_s26, 3 }
  0x1a   : > { %284 = vmatpush.msra.mxu0 %v261_v2  ;;  %v293_v7 = vld [vmem:[%s789_s2] sm:$0xff]  ;;  %s257_s14 = scalar_lea.vmem %s797_s0, %s456_s11  ;;  %s736_s0 = scalar_lea.vmem [#allocation4], %s454_s16 }
  0x1b   : > { %314 = vmatpush.msra.mxu1 %v295_v3  ;;  %v258_v8 = vld [vmem:[%s257_s14] sm:$0xff]  ;;  %s341_s14 = sshll.u32 %s246_s13, 4  ;;  %s355_s18 = sshll.u32 %s736_s0, 4  ;;  %s342_s14 = int_to_ptr.vmem [resolvable:$true] %s341_s14  ;;  %s739_s18 = int_to_ptr.vmem [resolvable:$true] %s355_s18 }
  0x1c   : > { %285 = vmatpush.msra.mxu0 %v260_v4  ;;  %v509_v9 = vld [vmem:[%s790_s3] ss:$0 sm:$0xff]  ;;  %s525_s16 = sshra.s32 %s344_s25, 4  ;;  %s526_s16 = int_to_ptr.hbm [resolvable:$true] %s525_s16 }
  0x1d   : > { %315 = vmatpush.msra.mxu1 %v294_v5  ;;  %v510_v10 = vld [vmem:[%s791_s4] ss:$0 sm:$0xff]  ;;  %s527_s20 = scalar_lea.hbm %s526_s16, 8  ;;  %p532_p0 = scmp.lt.s32.totalorder %s526_s16, %s792_s5 }
  0x1e   : > { %286 = vmatpush.msra.mxu0 %v259_v6  ;;  %p528_p11 = scmp.ne.s32.totalorder %s526_s16, %s527_s20  ;;  %p533_p1 = scmp.lt.s32.totalorder %s531_s29, %s527_s20 }
  0x1f   : > { %316 = vmatpush.msra.mxu1 %v293_v7  ;;  %457 = vmatmul.msk.f32.vlgmr.msra.gmra.mxu0 %vm267_vm0, %v258_v8 }
  0x20   : > { %458 = vmatmul.msk.f32.vlgmr.msra.gmra.mxu1 %vm267_vm0, %v258_v8  ;;  %p529_p12 = pnand %p528_p11, %p680_p5  ;;  %p534_p2 = por %p533_p1, %p532_p0 }
  0x22   : > { %p530_p13 = pneg %p529_p12 }
  0x24   : > { %p535_p3 = pnand %p534_p2, %p530_p13 }
  0x9c   : > { %v288_v11 = vpop.f32.mrf.mxu0 }
  0x9d   : > { %v318_v12 = vpop.f32.mrf.mxu1  ;;  %v289_v13 = vadd.f32 %v509_v9, %v288_v11 }
  0x9e   : > { %v319_v14 = vadd.f32 %v510_v10, %v318_v12 }
  0x9f   : > { %292 = vst.msk [vmem:[%s246_s13] sm:$0xff] %vm291_vm1, %v289_v13 }
  0xa0   : > { %538 = shalt.err (!%p535_p3)
}
  0xa1   : > { %465 = dma.vmem_to_hbm [thread:$0]  (%p680_p5), %s342_s14, 128, %s344_s25, %s324_s17   ;;  %322 = vst.msk [vmem:[%s736_s0] sm:$0xff] %vm321_vm2, %v319_v14 }
  0xa2   : > { %s329_s11 = scalar_lea.sflag [#allocation5], %s720_s15  ;;  %s553_s12 = sshra.s32 %s741_s19, 4  ;;  %s554_s12 = int_to_ptr.hbm [resolvable:$true] %s553_s12 }
  0xa3   : > { %s555_s13 = scalar_lea.hbm %s554_s12, 8  ;;  %s559_s26 = scalar_lea.hbm %s793_s6, 16 }
  0xa4   : > { %p556_p4 = scmp.ne.s32.totalorder %s554_s12, %s555_s13  ;;  %p560_p9 = scmp.lt.s32.totalorder %s554_s12, %s793_s6 }
  0xa5   : > { %p561_p10 = scmp.lt.s32.totalorder %s559_s26, %s555_s13 }
  0xa6   : > { %p557_p7 = pnand %p556_p4, %p680_p5 }
  0xa7   : > { %p562_p11 = por %p561_p10, %p560_p9 }
  0xa8   : > { %p558_p8 = pneg %p557_p7 }
  0xaa   : > { %p563_p12 = pnand %p562_p11, %p558_p8 }
  0xac   : > { %566 = shalt.err (!%p563_p12)
}
  0xad   : > { %466 = dma.vmem_to_hbm [thread:$0]  (%p680_p5), %s739_s18, 128, %s741_s19, %s329_s11  }
  0xae PF: > { %p476_p13 = scmp.ge.s32.totalorder %s605_s24, 2  ;;  %s369_s0 = sand.u32 1, %s593_s21  }
  0xaf   : > { %s370_s15 = scalar_lea.sflag [#allocation3], %s369_s0 }
  0xb0   : > { %p470_p0 = pnand %p476_p13, %p684_p6 }
  0xb2   : > { %p471_p1 = pneg %p470_p0 }
  0xb4   : > { %584 = dma.done.wait (%p471_p1), %s370_s15, 128  }
  0xb5   : > { %586 = vsyncadd (%p471_p1), %s370_s15, 4294967168  ;;  %s380_s14 = scalar_lea.sflag [#allocation5], %s369_s0 }
  0xb6   : > { %588 = dma.done.wait (%p471_p1), %s380_s14, 128  }
  0xb7   : > { %590 = vsyncadd (%p471_p1), %s380_s14, 4294967168  ;;  %p20_p5 = scmp.ge.s32.totalorder %s667_s27, 4   ;;  %s798_s21 = smov %s597_s22 }
  0xb8   : > { %s799_s22 = smov %s601_s23  ;;  %s800_s23 = smov %s678_s30 }
  0xb9   : > { %s801_s24 = smov %s667_s27  ;;  %22 = sbr.rel (!%p20_p5) target bundleno = 7 (0x7), region = 92 }
  0xbe   :  { %386 = vsyncpa [#allocation3], 1 }
  0xbf   :  { %388 = vsyncpa [#allocation3 + $0x1], 1 }
  0xc0   :  { %389 = vsyncpa [#allocation5], 1 }
  0xc1   :  { %391 = vsyncpa [#allocation5 + $0x1], 1 }

</bundles_post_ra>
